<compile_context>
chip_gen: v7x
topology: tpu7x:2x2x1
jax: 0.10.0
libtpu: 0.0.40
codegen_flags: <defaults>
</compile_context>

<pallas_src>
import jax
import jax.numpy as jnp
from jax.experimental import pallas as pl
from jax.experimental.pallas import tpu as pltpu


# ----------------------------------------------------------------------------
# Kernels
# ----------------------------------------------------------------------------
def _cat3_small_kernel(x_ref, o_ref):
    """Whole-array path: three direct sub-block stores (no 3x-wide intermediate).

    For tiny widths (3*C < 128) these are masked vst.msk stores; that is
    unavoidable at this size and irrelevant (the whole op is launch-bound).
    """
    x = x_ref[...]
    c = x_ref.shape[1]
    o_ref[:, 0:c] = x
    o_ref[:, c:2 * c] = x
    o_ref[:, 2 * c:3 * c] = x


def _copy_block_kernel(x_ref, o_ref):
    """Tiled path: pure full-block copy.

    Replication lives entirely in the output BlockSpec index_map, so this is a
    single unmasked, lane-dense (tc % 128 == 0) store per grid step.
    """
    o_ref[...] = x_ref[...]


# ----------------------------------------------------------------------------
# Wrapper
# ----------------------------------------------------------------------------
def _pick_tile(n, candidates):
    for c in candidates:
        if n % c == 0:
            return c
    return n


def cat3_cols(x1, x2=None):
    """Equivalent of torch.cat([x1, x1, x1], dim=1); x2 is ignored (as in the module)."""
    del x2  # unused, exactly like the reference forward()
    rows, cols = x1.shape
    out_shape = jax.ShapeDtypeStruct((rows, 3 * cols), x1.dtype)
    itemsize = jnp.dtype(x1.dtype).itemsize
    # Pure bandwidth op: read R*C once, write 3*R*C once.
    cost = pl.CostEstimate(
        flops=0,
        transcendentals=0,
        bytes_accessed=4 * rows * cols * itemsize,
    )

    # ------------------------------------------------------------------
    # Fast path: (8, 128)-aligned inputs -> column-tiled grid, lane-dense
    # full-block stores, replica factor handled in the output index_map.
    # ------------------------------------------------------------------
    if rows % 8 == 0 and cols % 128 == 0:
        tm = _pick_tile(rows, (512, 256, 128, 64, 32, 16, 8))
        tc = _pick_tile(cols, (512, 256, 128))
        nr, nc = rows // tm, cols // tc

        return pl.pallas_call(
            _copy_block_kernel,
            out_shape=out_shape,
            grid=(nr, nc, 3),
            in_specs=[
                # Input block index ignores the replica axis r (innermost):
                # Pallas skips the re-fetch, so x1 is read from HBM once.
                pl.BlockSpec((tm, tc), lambda i, j, r: (i, j)),
            ],
            out_specs=pl.BlockSpec(
                # Replica r of input block (i, j) lands at output block
                # column r*nc + j  ==  element columns [r*C + j*tc, ...).
                (tm, tc),
                lambda i, j, r: (i, r * nc + j),
            ),
            compiler_params=pltpu.CompilerParams(
                dimension_semantics=("parallel", "parallel", "arbitrary"),
            ),
            cost_estimate=cost,
        )(x1)

    # ------------------------------------------------------------------
    # Small / unaligned path (covers the module's (4, 2) toy input):
    # whole arrays resident in VMEM, single invocation, three sub-stores.
    # ------------------------------------------------------------------
    return pl.pallas_call(
        _cat3_small_kernel,
        out_shape=out_shape,
        in_specs=[pl.BlockSpec(memory_space=pltpu.MemorySpace.VMEM)],
        out_specs=pl.BlockSpec(memory_space=pltpu.MemorySpace.VMEM),
        cost_estimate=cost,
    )(x1)


# ----------------------------------------------------------------------------
# Self-test
# ----------------------------------------------------------------------------
if __name__ == "__main__":
    key = jax.random.PRNGKey(0)
    k1, k2, k3 = jax.random.split(key, 3)

    # Toy shapes from the original module: x1, x2 are (4, 2).
    x1 = jax.random.normal(k1, (4, 2), dtype=jnp.float32)
    x2 = jax.random.normal(k2, (4, 2), dtype=jnp.float32)  # unused, as in forward()

    out_small = cat3_cols(x1, x2)
    jax.block_until_ready(out_small)
    ref_small = jnp.concatenate([x1, x1, x1], axis=1)
    assert out_small.shape == (4, 6)
    assert jnp.array_equal(out_small, ref_small), "small-path mismatch vs reference"

    # (8, 128)-aligned shape exercising the tiled, lane-dense fast path.
    xb = jax.random.normal(k3, (256, 256), dtype=jnp.float32)
    out_big = cat3_cols(xb)
    jax.block_until_ready(out_big)
    ref_big = jnp.concatenate([xb, xb, xb], axis=1)
    assert out_big.shape == (256, 768)
    assert jnp.array_equal(out_big, ref_big), "tiled-path mismatch vs reference"

    print("KERNEL_OK")
</pallas_src>

<mosaic_0001>
module attributes {stable_mosaic.version = 11 : i64} {
  func.func @_cat3_small_kernel(%arg0: memref<4x2xf32, #tpu.memory_space<vmem>>, %arg1: memref<4x6xf32, #tpu.memory_space<vmem>>) attributes {dimension_semantics = [], scalar_prefetch = 0 : i64, scratch_operands = 0 : i64, tpu.core_type = #tpu.core_type<tc>} {
    %c0 = arith.constant 0 : index
    %c0_0 = arith.constant 0 : index
    %0 = vector.load %arg0[%c0, %c0_0] : memref<4x2xf32, #tpu.memory_space<vmem>>, vector<4x2xf32>
    %c0_1 = arith.constant 0 : index
    %c0_2 = arith.constant 0 : index
    %1 = vector.load %arg1[%c0_1, %c0_2] : memref<4x6xf32, #tpu.memory_space<vmem>>, vector<4x2xf32>
    tpu.vector_store %arg1[%c0_1, %c0_2], %0 {strides = array<i32>} : memref<4x6xf32, #tpu.memory_space<vmem>>, vector<4x2xf32>,
    %c0_3 = arith.constant 0 : index
    %c2 = arith.constant 2 : index
    %2 = vector.load %arg1[%c0_3, %c2] : memref<4x6xf32, #tpu.memory_space<vmem>>, vector<4x2xf32>
    tpu.vector_store %arg1[%c0_3, %c2], %0 {strides = array<i32>} : memref<4x6xf32, #tpu.memory_space<vmem>>, vector<4x2xf32>,
    %c0_4 = arith.constant 0 : index
    %c4 = arith.constant 4 : index
    %3 = vector.load %arg1[%c0_4, %c4] : memref<4x6xf32, #tpu.memory_space<vmem>>, vector<4x2xf32>
    tpu.vector_store %arg1[%c0_4, %c4], %0 {strides = array<i32>} : memref<4x6xf32, #tpu.memory_space<vmem>>, vector<4x2xf32>,
    return
  }
}

</mosaic_0001>

<bundles_post_ra>
// kernel: tpu_custom_call.1
= control target key start
LH: loop header
LB: loop body
LE: loop exit
PB: predicated region body
PF: predicated region fallthrough
CT: control target
= control target key end

     0   :  { %vm10_vm0 = vcmask 11264   ;;  %s64_s8 = smov 2   ;;  %s92_s0 = inlined_call_operand.vmem [shape: f32[4,2], index: 0, kind: input, shape index: {}]   ;;  %s93_s1 = inlined_call_operand.hbm [shape: f32[4,6], index: 1, kind: output, shape index: {}]  }
   0x1   :  { %v9_v0 = vld [vmem:[%s92_s0] sm:$0xf] }
   0x2   :  { %13 = vrot.lane.b32.xlu0 %v9_v0, %s64_s8  ;;  %11 = vst.msk [vmem:[#allocation2] sm:$0xf] %vm10_vm0, %v9_v0 }
   0x3   :  { %6 = vsyncpa [#allocation3], 0  ;;  %s65_s9 = smov 4   ;;  %vm16_vm1 = vcmask 27664   ;;  %s66_s10 = smov [#allocation2]   ;;  %vm21_vm2 = vcmask 44064  }
   0x4   :  { %s29_s11 = sshll.u32 %s66_s10, 4  ;;  %s30_s11 = int_to_ptr.vmem [resolvable:$true] %s29_s11 }
   0x5   :  { %s40_s12 = scalar_lea.vmem %s30_s11, 64  ;;  %p45_p1 = scmp.lt.s32.totalorder %s30_s11, %s30_s11 }
   0x6   :  { %18 = vrot.lane.b32.xlu0 %v9_v0, %s65_s9  ;;  %p41_p0 = scmp.ne.s32.totalorder %s30_s11, %s40_s12  ;;  %p46_p2 = scmp.lt.s32.totalorder %s40_s12, %s40_s12 }
   0x8   :  { %p47_p3 = por %p46_p2, %p45_p1 }
   0xa   :  { %p48_p4 = pnand %p47_p3, %p41_p0 }
  0x74   :  { %v14_v1 = vpop.permute.xlu0 %13 }
  0x75   :  { %17 = vst.msk [vmem:[#allocation2] sm:$0xf] %vm16_vm1, %v14_v1 }
  0x78   :  { %v19_v2 = vpop.permute.xlu0 %18 }
  0x79   :  { %22 = vst.msk [vmem:[#allocation2] sm:$0xf] %vm21_vm2, %v19_v2 }
  0x7a   :  { %51 = shalt.err (!%p48_p4)
}
  0x7b   :  { %s52_s14 = scalar_lea.hbm %s93_s1, 64 }
  0x7c   :  { %p53_p5 = scmp.ne.s32.totalorder %s93_s1, %s52_s14  ;;  %p56_p6 = scmp.lt.u32.totalorder %s52_s14, %s93_s1 }
  0x7e   :  { %p58_p7 = pnand %p56_p6, %p53_p5 }
  0x80   :  { %61 = shalt.err (!%p58_p7)
}
  0x81   :  { %32 = dma.vmem_to_hbm [thread:$0]  %s30_s11, 64, %s93_s1, [#allocation3]  }
  0x82   :  { %62 = dma.done.wait [#allocation3], 64  }
  0x83   :  { %63 = vsyncadd [#allocation3], 4294967232 }
  0x84   :  { %36 = vsyncpa [#allocation3], 1 }

</bundles_post_ra>
